<compile_context>
chip_gen: v7x
topology: tpu7x:2x2x1
jax: 0.10.0
libtpu: 0.0.40
codegen_flags: <defaults>
</compile_context>

<pallas_src>
from functools import partial

import jax
import jax.numpy as jnp
from jax import lax
from jax.experimental import pallas as pl
from jax.experimental.pallas import tpu as pltpu

EPS = 1e-5


# ---------------------------------------------------------------------------
# Fused kernel: BN(affine-folded) -> tanh(x/3)*3 -> per-pixel (Cin -> Cout*4)
# ---------------------------------------------------------------------------
def _fused_bn_tanh_deconv_kernel(x_ref, scale_ref, shift_ref, w_ref, bias_ref,
                                 o_ref, *, use_mxu):
    # x_ref block: (1, Cin, TL)  -> lane-dense spatial tile
    x = x_ref[0].astype(jnp.float32)                          # (Cin, TL)
    # scale/shift already fold BN affine AND the /3 of the tanh activation.
    act = jnp.tanh(x * scale_ref[...] + shift_ref[...]) * 3.0  # (Cin, TL)

    if use_mxu:
        # w_ref: (Cout*4, Cin) -- contraction large enough to be worth the MXU.
        y = jnp.dot(w_ref[...], act, preferred_element_type=jnp.float32)
    else:
        # Tiny Cin: unrolled VPU multiply-accumulates (MXU would be ~1% utilized).
        # w_ref: (Cin, Cout*4, 1)
        cout4 = o_ref.shape[1]
        y = jnp.zeros((cout4, x.shape[1]), jnp.float32)
        for c in range(x.shape[0]):
            y = y + w_ref[c] * act[c:c + 1, :]                 # (Cout4,1)*(1,TL)

    o_ref[0] = (y + bias_ref[...]).astype(o_ref.dtype)         # (Cout*4, TL)


def _pick_lane_tile(hw, max_tile=1024):
    """Largest multiple-of-128 divisor of hw (capped), preferring >=2 grid steps."""
    if hw % 128 != 0:
        return hw                                   # full-extent block is legal
    divisors = [t for t in range(128, min(hw, max_tile) + 1, 128) if hw % t == 0]
    multi = [t for t in divisors if hw // t >= 2]   # keep the pipeline busy
    return max(multi) if multi else max(divisors)


# ---------------------------------------------------------------------------
# Forward wrapper
# ---------------------------------------------------------------------------
def transposed_convolution_forward(x_nchw, params):
    gamma, beta, mean, var, weight, bias = params
    n, c_in, h, w = x_nchw.shape
    assert weight.shape[0] == c_in and weight.shape[2:] == (2, 2)
    c_out = weight.shape[1]
    cout4 = c_out * 4
    hw = h * w

    # Fold BN (eval) and the /3 of the activation: act = tanh(x*scale + shift)*3
    bn_scale = gamma / jnp.sqrt(var + EPS)
    scale = (bn_scale / 3.0).reshape(c_in, 1).astype(jnp.float32)
    shift = ((beta - mean * bn_scale) / 3.0).reshape(c_in, 1).astype(jnp.float32)
    # bias per fused output row o = co*4 + kh*2 + kw
    bias2 = jnp.repeat(bias, 4).reshape(cout4, 1).astype(jnp.float32)

    use_mxu = c_in >= 32
    if use_mxu:
        # (Cout*4, Cin): row o = co*4 + kh*2 + kw
        w_arg = jnp.transpose(weight, (1, 2, 3, 0)).reshape(cout4, c_in)
        w_spec = pl.BlockSpec((cout4, c_in), lambda i, j: (0, 0))
    else:
        # (Cin, Cout*4, 1): w_arg[ci, co*4+kh*2+kw, 0] = weight[ci, co, kh, kw]
        w_arg = weight.reshape(c_in, cout4, 1)
        w_spec = pl.BlockSpec((c_in, cout4, 1), lambda i, j: (0, 0, 0))

    tl = _pick_lane_tile(hw)
    x2 = x_nchw.reshape(n, c_in, hw)

    out2 = pl.pallas_call(
        partial(_fused_bn_tanh_deconv_kernel, use_mxu=use_mxu),
        out_shape=jax.ShapeDtypeStruct((n, cout4, hw), x_nchw.dtype),
        grid=(n, hw // tl),
        in_specs=[
            pl.BlockSpec((1, c_in, tl), lambda i, j: (i, 0, j)),
            pl.BlockSpec((c_in, 1), lambda i, j: (0, 0)),
            pl.BlockSpec((c_in, 1), lambda i, j: (0, 0)),
            w_spec,
            pl.BlockSpec((cout4, 1), lambda i, j: (0, 0)),
        ],
        out_specs=pl.BlockSpec((1, cout4, tl), lambda i, j: (i, 0, j)),
        compiler_params=pltpu.CompilerParams(
            dimension_semantics=("parallel", "parallel")),
    )(x2, scale, shift, w_arg, bias2)

    # Sub-pixel scatter into the 2x-upsampled grid (pure layout plumbing).
    out6 = out2.reshape(n, c_out, 2, 2, h, w)                 # (n, co, kh, kw, h, w)
    out = jnp.transpose(out6, (0, 1, 4, 2, 5, 3)).reshape(n, c_out, 2 * h, 2 * w)
    return out


# ---------------------------------------------------------------------------
# Deterministic parameters (inference-mode BN stats + ConvTranspose weights)
# ---------------------------------------------------------------------------
def init_params(key, in_channels, num_filters):
    k1, k2, k3, k4, k5, k6 = jax.random.split(key, 6)
    gamma = 1.0 + 0.1 * jax.random.normal(k1, (in_channels,), jnp.float32)
    beta = 0.1 * jax.random.normal(k2, (in_channels,), jnp.float32)
    mean = 0.1 * jax.random.normal(k3, (in_channels,), jnp.float32)
    var = jnp.abs(jax.random.normal(k4, (in_channels,), jnp.float32)) + 0.5
    fan = in_channels * 2 * 2
    weight = jax.random.normal(
        k5, (in_channels, num_filters, 2, 2), jnp.float32) / jnp.sqrt(float(fan))
    bias = 0.1 * jax.random.normal(k6, (num_filters,), jnp.float32)
    return gamma, beta, mean, var, weight, bias


# ---------------------------------------------------------------------------
# Pure-JAX reference (independent path via lax.conv_general_dilated)
# ---------------------------------------------------------------------------
def reference_forward(x, params):
    gamma, beta, mean, var, weight, bias = params
    inv = 1.0 / jnp.sqrt(var + EPS)
    xn = (x - mean[None, :, None, None]) * inv[None, :, None, None]
    xn = xn * gamma[None, :, None, None] + beta[None, :, None, None]
    act = jnp.tanh(xn / 3.0) * 3.0
    # ConvTranspose2d(k=2, s=2, p=0) == conv with lhs_dilation=2, padding k-1,
    # using the spatially-flipped, channel-transposed kernel.
    w_conv = jnp.flip(jnp.transpose(weight, (1, 0, 2, 3)), axis=(2, 3))
    out = lax.conv_general_dilated(
        act, w_conv, window_strides=(1, 1), padding=[(1, 1), (1, 1)],
        lhs_dilation=(2, 2), dimension_numbers=("NCHW", "OIHW", "NCHW"))
    return out + bias[None, :, None, None]


if __name__ == "__main__":
    in_channels, num_filters = 4, 8
    N, H, W = 2, 16, 16

    key = jax.random.PRNGKey(0)
    key, xkey, pkey = jax.random.split(key, 3)
    x = jax.random.normal(xkey, (N, in_channels, H, W), jnp.float32)
    params = init_params(pkey, in_channels, num_filters)

    out = transposed_convolution_forward(x, params)
    out = jax.block_until_ready(out)

    ref = reference_forward(x, params)
    assert out.shape == (N, num_filters, 2 * H, 2 * W), out.shape
    max_err = float(jnp.max(jnp.abs(out - ref)))
    assert jnp.allclose(out, ref, rtol=1e-4, atol=1e-4), max_err

    print("KERNEL_OK")
</pallas_src>

<mosaic_0001>
module attributes {stable_mosaic.version = 11 : i64} {
  func.func @_fused_bn_tanh_deconv_kernel(%arg0: i32, %arg1: i32, %arg2: memref<1x4x128xf32, #tpu.memory_space<vmem>>, %arg3: memref<4x1xf32, #tpu.memory_space<vmem>>, %arg4: memref<4x1xf32, #tpu.memory_space<vmem>>, %arg5: memref<4x32x1xf32, #tpu.memory_space<vmem>>, %arg6: memref<32x1xf32, #tpu.memory_space<vmem>>, %arg7: memref<1x32x128xf32, #tpu.memory_space<vmem>>) attributes {dimension_semantics = [#tpu.dimension_semantics<parallel>, #tpu.dimension_semantics<parallel>], iteration_bounds = array<i64: 2, 2>, scalar_prefetch = 0 : i64, scratch_operands = 0 : i64, tpu.core_type = #tpu.core_type<tc>, window_params = [{transform_indices = @transform_0, window_bounds = array<i64: 1, 4, 128>}, {pipeline_mode = #tpu.pipeline_mode<synchronous>, transform_indices = @transform_1, window_bounds = array<i64: 4, 1>}, {pipeline_mode = #tpu.pipeline_mode<synchronous>, transform_indices = @transform_2, window_bounds = array<i64: 4, 1>}, {pipeline_mode = #tpu.pipeline_mode<synchronous>, transform_indices = @transform_3, window_bounds = array<i64: 4, 32, 1>}, {pipeline_mode = #tpu.pipeline_mode<synchronous>, transform_indices = @transform_4, window_bounds = array<i64: 32, 1>}, {transform_indices = @transform_5, window_bounds = array<i64: 1, 32, 128>}]} {
    %c0 = arith.constant 0 : index
    %c0_0 = arith.constant 0 : index
    %c0_1 = arith.constant 0 : index
    %0 = vector.load %arg2[%c0, %c0_0, %c0_1] : memref<1x4x128xf32, #tpu.memory_space<vmem>>, vector<1x4x128xf32>
    %1 = vector.shape_cast %0 : vector<1x4x128xf32> to vector<4x128xf32>
    %c0_2 = arith.constant 0 : index
    %c0_3 = arith.constant 0 : index
    %2 = vector.load %arg3[%c0_2, %c0_3] : memref<4x1xf32, #tpu.memory_space<vmem>>, vector<4x1xf32>
    %3 = vector.broadcast %2 : vector<4x1xf32> to vector<4x128xf32>
    %4 = arith.mulf %1, %3 : vector<4x128xf32>
    %c0_4 = arith.constant 0 : index
    %c0_5 = arith.constant 0 : index
    %5 = vector.load %arg4[%c0_4, %c0_5] : memref<4x1xf32, #tpu.memory_space<vmem>>, vector<4x1xf32>
    %6 = vector.broadcast %5 : vector<4x1xf32> to vector<4x128xf32>
    %7 = arith.addf %4, %6 : vector<4x128xf32>
    %8 = math.tanh %7 : vector<4x128xf32>
    %cst = arith.constant 3.000000e+00 : f32
    %9 = vector.broadcast %cst : f32 to vector<4x128xf32>
    %10 = arith.mulf %8, %9 : vector<4x128xf32>
    %cst_6 = arith.constant 0.000000e+00 : f32
    %11 = vector.broadcast %cst_6 : f32 to vector<32x128xf32>
    %c0_7 = arith.constant 0 : index
    %c0_8 = arith.constant 0 : index
    %c0_9 = arith.constant 0 : index
    %12 = vector.load %arg5[%c0_7, %c0_8, %c0_9] : memref<4x32x1xf32, #tpu.memory_space<vmem>>, vector<1x32x1xf32>
    %13 = vector.shape_cast %12 : vector<1x32x1xf32> to vector<32x1xf32>
    %14 = vector.extract_strided_slice %10 {offsets = [0, 0], sizes = [1, 128], strides = [1, 1]} : vector<4x128xf32> to vector<1x128xf32>
    %15 = vector.broadcast %13 : vector<32x1xf32> to vector<32x128xf32>
    %16 = vector.broadcast %14 : vector<1x128xf32> to vector<32x128xf32>
    %17 = arith.mulf %15, %16 : vector<32x128xf32>
    %18 = arith.addf %11, %17 : vector<32x128xf32>
    %c1 = arith.constant 1 : index
    %c0_10 = arith.constant 0 : index
    %c0_11 = arith.constant 0 : index
    %19 = vector.load %arg5[%c1, %c0_10, %c0_11] : memref<4x32x1xf32, #tpu.memory_space<vmem>>, vector<1x32x1xf32>
    %20 = vector.shape_cast %19 : vector<1x32x1xf32> to vector<32x1xf32>
    %21 = vector.extract_strided_slice %10 {offsets = [1, 0], sizes = [1, 128], strides = [1, 1]} : vector<4x128xf32> to vector<1x128xf32>
    %22 = vector.broadcast %20 : vector<32x1xf32> to vector<32x128xf32>
    %23 = vector.broadcast %21 : vector<1x128xf32> to vector<32x128xf32>
    %24 = arith.mulf %22, %23 : vector<32x128xf32>
    %25 = arith.addf %18, %24 : vector<32x128xf32>
    %c2 = arith.constant 2 : index
    %c0_12 = arith.constant 0 : index
    %c0_13 = arith.constant 0 : index
    %26 = vector.load %arg5[%c2, %c0_12, %c0_13] : memref<4x32x1xf32, #tpu.memory_space<vmem>>, vector<1x32x1xf32>
    %27 = vector.shape_cast %26 : vector<1x32x1xf32> to vector<32x1xf32>
    %28 = vector.extract_strided_slice %10 {offsets = [2, 0], sizes = [1, 128], strides = [1, 1]} : vector<4x128xf32> to vector<1x128xf32>
    %29 = vector.broadcast %27 : vector<32x1xf32> to vector<32x128xf32>
    %30 = vector.broadcast %28 : vector<1x128xf32> to vector<32x128xf32>
    %31 = arith.mulf %29, %30 : vector<32x128xf32>
    %32 = arith.addf %25, %31 : vector<32x128xf32>
    %c3 = arith.constant 3 : index
    %c0_14 = arith.constant 0 : index
    %c0_15 = arith.constant 0 : index
    %33 = vector.load %arg5[%c3, %c0_14, %c0_15] : memref<4x32x1xf32, #tpu.memory_space<vmem>>, vector<1x32x1xf32>
    %34 = vector.shape_cast %33 : vector<1x32x1xf32> to vector<32x1xf32>
    %35 = vector.extract_strided_slice %10 {offsets = [3, 0], sizes = [1, 128], strides = [1, 1]} : vector<4x128xf32> to vector<1x128xf32>
    %36 = vector.broadcast %34 : vector<32x1xf32> to vector<32x128xf32>
    %37 = vector.broadcast %35 : vector<1x128xf32> to vector<32x128xf32>
    %38 = arith.mulf %36, %37 : vector<32x128xf32>
    %39 = arith.addf %32, %38 : vector<32x128xf32>
    %c0_16 = arith.constant 0 : index
    %c0_17 = arith.constant 0 : index
    %40 = vector.load %arg6[%c0_16, %c0_17] : memref<32x1xf32, #tpu.memory_space<vmem>>, vector<32x1xf32>
    %41 = vector.broadcast %40 : vector<32x1xf32> to vector<32x128xf32>
    %42 = arith.addf %39, %41 : vector<32x128xf32>
    %c0_18 = arith.constant 0 : index
    %c0_19 = arith.constant 0 : index
    %c0_20 = arith.constant 0 : index
    %43 = vector.load %arg7[%c0_18, %c0_19, %c0_20] : memref<1x32x128xf32, #tpu.memory_space<vmem>>, vector<1x32x128xf32>
    %44 = vector.shape_cast %43 : vector<1x32x128xf32> to vector<32x128xf32>
    %45 = vector.shape_cast %42 : vector<32x128xf32> to vector<1x32x128xf32>
    tpu.vector_store %arg7[%c0_18, %c0_19, %c0_20], %45 {strides = array<i32>} : memref<1x32x128xf32, #tpu.memory_space<vmem>>, vector<1x32x128xf32>,
    return
  }
  func.func @transform_0(%arg0: i32, %arg1: i32) -> (i32, i32, i32) {
    %c0_i32 = arith.constant 0 : i32
    %c0_i32_0 = arith.constant 0 : i32
    return %arg0, %c0_i32, %arg1 : i32, i32, i32
  }
  func.func @transform_1(%arg0: i32, %arg1: i32) -> (i32, i32) {
    %c0_i32 = arith.constant 0 : i32
    %c0_i32_0 = arith.constant 0 : i32
    %c0_i32_1 = arith.constant 0 : i32
    return %c0_i32, %c0_i32_0 : i32, i32
  }
  func.func @transform_2(%arg0: i32, %arg1: i32) -> (i32, i32) {
    %c0_i32 = arith.constant 0 : i32
    %c0_i32_0 = arith.constant 0 : i32
    %c0_i32_1 = arith.constant 0 : i32
    return %c0_i32, %c0_i32_0 : i32, i32
  }
  func.func @transform_3(%arg0: i32, %arg1: i32) -> (i32, i32, i32) {
    %c0_i32 = arith.constant 0 : i32
    %c0_i32_0 = arith.constant 0 : i32
    %c0_i32_1 = arith.constant 0 : i32
    %c0_i32_2 = arith.constant 0 : i32
    return %c0_i32, %c0_i32_0, %c0_i32_1 : i32, i32, i32
  }
  func.func @transform_4(%arg0: i32, %arg1: i32) -> (i32, i32) {
    %c0_i32 = arith.constant 0 : i32
    %c0_i32_0 = arith.constant 0 : i32
    %c0_i32_1 = arith.constant 0 : i32
    return %c0_i32, %c0_i32_0 : i32, i32
  }
  func.func @transform_5(%arg0: i32, %arg1: i32) -> (i32, i32, i32) {
    %c0_i32 = arith.constant 0 : i32
    %c0_i32_0 = arith.constant 0 : i32
    return %arg0, %c0_i32, %arg1 : i32, i32, i32
  }
}

</mosaic_0001>

<bundles_post_ra>
// kernel: tpu_custom_call.1
= control target key start
LH: loop header
LB: loop body
LE: loop exit
PB: predicated region body
PF: predicated region fallthrough
CT: control target
= control target key end

     0   :  { %10 = vsyncpa [#allocation3], 0  ;;  %s985_s0 = inlined_call_operand.vmem [shape: f32[2,4,256], index: 0, kind: input, shape index: {}]   ;;  %s986_s1 = inlined_call_operand.vmem [shape: f32[4,1], index: 1, kind: input, shape index: {}]   ;;  %s987_s2 = inlined_call_operand.vmem [shape: f32[4,1], index: 2, kind: input, shape index: {}]   ;;  %s988_s3 = inlined_call_operand.vmem [shape: f32[4,32,1], index: 3, kind: input, shape index: {}]   ;;  %s989_s4 = inlined_call_operand.vmem [shape: f32[32,1], index: 4, kind: input, shape index: {}]   ;;  %s990_s5 = inlined_call_operand.hbm [shape: f32[2,32,256], index: 5, kind: output, shape index: {}]  }
   0x1   :  { %12 = vsyncpa [#allocation3 + $0x1], 0  ;;  %s775_s18 = smov 0   ;;  %s777_s19 = smov 0  }
   0x2   :  { %s779_s20 = smov 0   ;;  %s781_s21 = smov 0  }
   0x3   :  { %s783_s22 = smov 0   ;;  %s785_s23 = smov 0  }
   0x4   :  { %s787_s24 = smov 0   ;;  %s789_s25 = smov 0  }
   0x5 LB: > { %s540_s26 = sadd.s32 4294967295, %s738_s25   ;;  %s541_s27 = sadd.s32 4294967294, %s738_s25   ;;  %s738_s25 = sphi %s789_s25, %s18_s25   ;;  %s734_s24 = sphi %s787_s24, %s999_s24   ;;  %s730_s23 = sphi %s785_s23, %s998_s23   ;;  %s726_s22 = sphi %s783_s22, %s997_s22   ;;  %s722_s21 = sphi %s781_s21, %s996_s21   ;;  %s718_s20 = sphi %s779_s20, %s995_s20   ;;  %s714_s19 = sphi %s777_s19, %s994_s19   ;;  %s710_s18 = sphi %s775_s18, %s993_s18  }
   0x6   : > { %s27_s28 = sadd.s32 1, %s730_s23  ;;  %s30_s29 = sadd.s32 1, %s734_s24 }
   0x7   : > { %p28_p0 = scmp.ge.s32.totalorder %s27_s28, 2  ;;  %p161_p1 = scmp.ne.s32.totalorder %s718_s20, %s714_s19 }
   0x8   : > { %p162_p2 = scmp.eq.s32.totalorder %s540_s26, 3  ;;  %p167_p5 = scmp.ne.s32.totalorder %s714_s19, %s710_s18 }
   0x9   : > { %s1001_s28 = smov (%p28_p0, %s27_s28), 0  ;;  %s1003_s29 = smov (!%p28_p0, %s30_s29), %s734_s24 }
   0xa   : > { %s147_s30 = ssub.s32 %s730_s23, %s1001_s28  ;;  %p826_p3 = por %p162_p2, %p161_p1 }
   0xb   : > { %p32_p4 = scmp.ge.s32.totalorder %s1003_s29, 2  ;;  %p168_p6 = scmp.eq.s32.totalorder %s541_s27, 3 }
   0xc   : > { %p544_p7 = scmp.ge.s32.totalorder %s738_s25, 1  ;;  %p209_p9 = scmp.lt.s32.totalorder %s738_s25, 5 }
   0xd   : > { %s1005_s29 = smov (%p32_p4, %s1003_s29), 0  ;;  %p835_p8 = por %p168_p6, %p167_p5 }
   0xe   : > { %s146_s8 = ssub.s32 %s734_s24, %s1005_s29  ;;  %s151_s9 = sadd.s32 1, %s718_s20 }
   0xf   : > { %s148_s10 = sor.u32 %s147_s30, %s146_s8  ;;  %p210_p10 = pnand %p544_p7, %p209_p9 }
  0x10   : > { %p149_p11 = scmp.eq.s32.totalorder %s148_s10, 0  ;;  %v265_v0 = vld [vmem:[%s988_s3] sm:$0xff] (!%p210_p10)  ;;  %v740_v2 = vmov (!%p210_p10), 0   ;;  %v266_v3 = vld [vmem:[%s988_s3 + $0x8] sm:$0xff] (!%p210_p10)  ;;  %v268_v5 = vld [vmem:[%s988_s3 + $0x18] sm:$0xff] (!%p210_p10)  ;;  %p240_p12 = scmp.lt.s32.totalorder (!%p210_p10), %s726_s22, 1  ;;  %v289_v32 = vlaneseq (!%p210_p10) }
  0x11   : > { %213 = sbr.rel (%p210_p10) target bundleno = 205 (0xcd), region = 40  ;;  %v249_v1 = vld [vmem:[%s986_s1] sm:$0xf] (!%p210_p10)  ;;  %641 = vset.pattern.permute.xlu1 (!%p210_p10), %v740_v2  ;;  %640 = vset.pattern.permute.xlu0 (!%p210_p10), %v740_v2  ;;  %v267_v6 = vld [vmem:[%s988_s3 + $0x10] sm:$0xff] (!%p210_p10)  ;;  %v549_v7 = vld [vmem:[%s988_s3 + $0x28] sm:$0xff] (!%p210_p10)  ;;  %p242_p13 = scmp.lt.s32.totalorder (!%p210_p10), %s722_s21, 1 }
  0x12   : > { %s844_s11 = scalar_select %p149_p11, %s718_s20, %s151_s9  }
  0x13   : > { %271 = vperm.xlu1 (!%p210_p10), %641, %v265_v0   ;;  %252 = vperm.xlu0 (!%p210_p10), %640, %v249_v1   ;;  %v256_v4 = vld [vmem:[%s987_s2] sm:$0xf] (!%p210_p10)  ;;  %v551_v9 = vld [vmem:[%s988_s3 + $0x38] sm:$0xff] (!%p210_p10)  ;;  %v550_v10 = vld [vmem:[%s988_s3 + $0x30] sm:$0xff] (!%p210_p10)  ;;  %v290_v35 = vshrl.u32 (!%p210_p10), %v289_v32, 7  ;;  %s237_s16 = sand.u32 (!%p210_p10), 1, %s714_s19  }
  0x14   : > { %v548_v8 = vld [vmem:[%s988_s3 + $0x20] sm:$0xff] (!%p210_p10)  ;;  %v553_v11 = vld [vmem:[%s988_s3 + $0x48] sm:$0xff] (!%p210_p10)  ;;  %v555_v13 = vld [vmem:[%s988_s3 + $0x58] sm:$0xff] (!%p210_p10)  ;;  %s545_s17 = sshll.u32 (!%p210_p10), %s237_s16, 5  ;;  %s561_s26 = sshll.u32 (!%p210_p10), %s726_s22, 3 }
  0x15   : > { %v552_v12 = vld [vmem:[%s988_s3 + $0x40] sm:$0xff] (!%p210_p10)  ;;  %v554_v14 = vld [vmem:[%s988_s3 + $0x50] sm:$0xff] (!%p210_p10)  ;;  %v557_v15 = vld [vmem:[%s988_s3 + $0x68] sm:$0xff] (!%p210_p10)  ;;  %v291_v39 = vsub.s32 (!%p210_p10), 0, %v290_v35  ;;  %v328_v40 = vsub.s32 (!%p210_p10), 1, %v290_v35  ;;  %v365_v46 = vsub.s32 (!%p210_p10), 2, %v290_v35  ;;  %s456_s27 = sadd.s32 (!%p210_p10), %s722_s21, %s561_s26 }
  0x16   : > { %v556_v16 = vld [vmem:[%s988_s3 + $0x60] sm:$0xff] (!%p210_p10)  ;;  %v559_v17 = vld [vmem:[%s988_s3 + $0x78] sm:$0xff] (!%p210_p10)  ;;  %v558_v18 = vld [vmem:[%s988_s3 + $0x70] sm:$0xff] (!%p210_p10)  ;;  %v402_v49 = vsub.s32 (!%p210_p10), 3, %v290_v35  ;;  %s741_s14 = smov (!%p210_p10), [#allocation2]  }
  0x17   : > { %276 = vperm.xlu1 (!%p210_p10), %641, %v266_v3   ;;  %259 = vperm.xlu0 (!%p210_p10), %640, %v256_v4   ;;  %v413_v19 = vld [vmem:[%s989_s4 + $0x8] sm:$0xff] (!%p210_p10)  ;;  %v412_v20 = vld [vmem:[%s989_s4] sm:$0xff] (!%p210_p10)  ;;  %v415_v21 = vld [vmem:[%s989_s4 + $0x18] sm:$0xff] (!%p210_p10) }
  0x18   : > { %v414_v22 = vld [vmem:[%s989_s4 + $0x10] sm:$0xff]  ;;  %s241_s30 = scalar_select %p240_p12, %s726_s22, 1 }
  0x19   : > { %s243_s8 = scalar_select %p242_p13, %s722_s21, 1 }
  0x1a   : > { %s546_s9 = sshll.u32 %s241_s30, 1  ;;  %s239_s30 = scalar_lea.vmem [#allocation2], %s545_s17 }
  0x1b   : > { %286 = vperm.xlu1 %641, %v268_v5   ;;  %281 = vperm.xlu0 %640, %v267_v6   ;;  %s245_s10 = sadd.s32 %s546_s9, %s243_s8  ;;  %s459_s8 = sshll.u32 %s239_s30, 4  ;;  %s924_s8 = int_to_ptr.vmem [resolvable:$true] %s459_s8 }
  0x1c   : > { %s547_s12 = sshll.u32 %s245_s10, 2  ;;  %s562_s9 = sshll.u32 %s456_s27, 7 }
  0x1d   : > { %s247_s15 = scalar_lea.vmem %s985_s0, %s547_s12  ;;  %s929_s10 = scalar_lea.hbm %s990_s5, %s562_s9 }
  0x1e   : > { %v248_v25 = vld [vmem:[%s247_s15] sm:$0xf]  ;;  %s933_s12 = scalar_lea.sflag [#allocation3], %s237_s16  ;;  %s644_s13 = scalar_lea.vmem %s924_s8, 512 }
  0x1f   : > { %313 = vperm.xlu1 %641, %v549_v7   ;;  %308 = vperm.xlu0 %640, %v548_v8   ;;  %p645_p0 = scmp.ne.s32.totalorder %s924_s8, %s644_s13  ;;  %s648_s15 = sshll.u32 %s741_s14, 4  ;;  %s649_s15 = int_to_ptr.vmem [resolvable:$false] %s648_s15 }
  0x20   : > { %s650_s17 = scalar_lea.vmem %s649_s15, 1024  ;;  %p651_p4 = scmp.lt.s32.totalorder %s924_s8, %s649_s15 }
  0x21   : > { %p646_p1 = pnand %p645_p0, %p826_p3  ;;  %p652_p5 = scmp.lt.s32.totalorder %s650_s17, %s644_s13 }
  0x23   : > { %323 = vperm.xlu1 %641, %v551_v9   ;;  %318 = vperm.xlu0 %640, %v550_v10   ;;  %p647_p2 = pneg %p646_p1  ;;  %p653_p6 = por %p652_p5, %p651_p4 }
  0x25   : > { %p654_p7 = pnand %p653_p6, %p647_p2 }
  0x27   : > { %350 = vperm.xlu1 %641, %v553_v11   ;;  %345 = vperm.xlu0 %640, %v552_v12  }
  0x2b   : > { %360 = vperm.xlu1 %641, %v555_v13   ;;  %355 = vperm.xlu0 %640, %v554_v14  }
  0x2f   : > { %387 = vperm.xlu1 %641, %v557_v15   ;;  %382 = vperm.xlu0 %640, %v556_v16  }
  0x33   : > { %397 = vperm.xlu1 %641, %v559_v17   ;;  %392 = vperm.xlu0 %640, %v558_v18  }
  0x37   : > { %423 = vperm.xlu1 %641, %v413_v19   ;;  %418 = vperm.xlu0 %640, %v412_v20  }
  0x3b   : > { %433 = vperm.xlu1 %641, %v415_v21   ;;  %428 = vperm.xlu0 %640, %v414_v22  }
  0x92   : > { %v272_v23 = vpop.permute.xlu1 %271  ;;  %v253_v24 = vpop.permute.xlu0 %252 }
  0x93   : > { %v255_v26 = vmul.f32 %v253_v24, %v248_v25 }
  0x96   : > { %v277_v27 = vpop.permute.xlu1 %276  ;;  %v260_v28 = vpop.permute.xlu0 %259 }
  0x97   : > { %v262_v29 = vadd.f32 %v260_v28, %v255_v26 }
  0x99   : > { %642 = vtanh.f32 %v262_v29 }
  0x9a   : > { %v287_v30 = vpop.permute.xlu1 %286  ;;  %v282_v31 = vpop.permute.xlu0 %281 }
  0x9e   : > { %v314_v33 = vpop.permute.xlu1 %313  ;;  %v309_v34 = vpop.permute.xlu0 %308 }
  0xa2   : > { %v324_v36 = vpop.permute.xlu1 %323  ;;  %v319_v37 = vpop.permute.xlu0 %318 }
  0xa3   : > { %v643_v38 = vpop.eup %642 }
  0xa4   : > { %v264_v41 = vmul.f32 3.0, %v643_v38 }
  0xa6   : > { %v351_v42 = vpop.permute.xlu1 %350  ;;  %v346_v43 = vpop.permute.xlu0 %345  ;;  %v292_v44 = vrot.slane %v264_v41, %v291_v39  ;;  %v329_v45 = vrot.slane %v264_v41, %v328_v40  ;;  %v366_v54 = vrot.slane %v264_v41, %v365_v46  ;;  %v403_v63 = vrot.slane %v264_v41, %v402_v49 }
  0xa8   : > { %v294_v50 = vmul.f32 %v292_v44, %v277_v27  ;;  %v331_v51 = vmul.f32 %v329_v45, %v314_v33  ;;  %v293_v52 = vmul.f32 %v292_v44, %v272_v23  ;;  %v330_v53 = vmul.f32 %v329_v45, %v309_v34 }
  0xa9   : > { %v296_v55 = vmul.f32 %v292_v44, %v287_v30  ;;  %v295_v56 = vmul.f32 %v292_v44, %v282_v31  ;;  %v333_v57 = vmul.f32 %v329_v45, %v324_v36  ;;  %v332_v58 = vmul.f32 %v329_v45, %v319_v37 }
  0xaa   : > { %v361_v47 = vpop.permute.xlu1 %360  ;;  %v356_v48 = vpop.permute.xlu0 %355  ;;  %v335_v61 = vadd.f32 %v331_v51, %v294_v50  ;;  %v334_v62 = vadd.f32 %v330_v53, %v293_v52  ;;  %v368_v0 = vmul.f32 %v366_v54, %v351_v42  ;;  %v367_v1 = vmul.f32 %v366_v54, %v346_v43 }
  0xab   : > { %v337_v4 = vadd.f32 %v333_v57, %v296_v55  ;;  %v336_v5 = vadd.f32 %v332_v58, %v295_v56  ;;  %v370_v10 = vmul.f32 %v366_v54, %v361_v47  ;;  %v369_v11 = vmul.f32 %v366_v54, %v356_v48 }
  0xac   : > { %v372_v8 = vadd.f32 %v368_v0, %v335_v61  ;;  %v371_v9 = vadd.f32 %v367_v1, %v334_v62 }
  0xad   : > { %v374_v18 = vadd.f32 %v370_v10, %v337_v4  ;;  %v373_v19 = vadd.f32 %v369_v11, %v336_v5 }
  0xae   : > { %v388_v59 = vpop.permute.xlu1 %387  ;;  %v383_v60 = vpop.permute.xlu0 %382 }
  0xaf   : > { %v405_v2 = vmul.f32 %v403_v63, %v388_v59  ;;  %v404_v3 = vmul.f32 %v403_v63, %v383_v60 }
  0xb1   : > { %v409_v14 = vadd.f32 %v405_v2, %v372_v8  ;;  %v408_v15 = vadd.f32 %v404_v3, %v371_v9 }
  0xb2   : > { %v398_v6 = vpop.permute.xlu1 %397  ;;  %v393_v7 = vpop.permute.xlu0 %392 }
  0xb3   : > { %v407_v12 = vmul.f32 %v403_v63, %v398_v6  ;;  %v406_v13 = vmul.f32 %v403_v63, %v393_v7 }
  0xb5   : > { %v411_v22 = vadd.f32 %v407_v12, %v374_v18  ;;  %v410_v23 = vadd.f32 %v406_v13, %v373_v19 }
  0xb6   : > { %v424_v16 = vpop.permute.xlu1 %423  ;;  %v419_v17 = vpop.permute.xlu0 %418 }
  0xb7   : > { %v437_v20 = vadd.f32 %v424_v16, %v409_v14  ;;  %v436_v21 = vadd.f32 %v419_v17, %v408_v15 }
  0xb9   : > { %441 = vst [vmem:[%s239_s30 + $0x8] sm:$0xff] %v437_v20  ;;  %440 = vst [vmem:[%s239_s30] sm:$0xff] %v436_v21 }
  0xba   : > { %v434_v24 = vpop.permute.xlu1 %433  ;;  %v429_v25 = vpop.permute.xlu0 %428 }
  0xbb   : > { %v439_v26 = vadd.f32 %v434_v24, %v411_v22  ;;  %v438_v27 = vadd.f32 %v429_v25, %v410_v23 }
  0xbd   : > { %443 = vst [vmem:[%s239_s30 + $0x18] sm:$0xff] %v439_v26  ;;  %442 = vst [vmem:[%s239_s30 + $0x10] sm:$0xff] %v438_v27 }
  0xbe   : > { %657 = shalt.err (!%p654_p7)
}
  0xbf   : > { %s658_s16 = scalar_lea.hbm %s929_s10, 512  ;;  %s662_s30 = scalar_lea.hbm %s990_s5, 2048 }
  0xc0   : > { %p659_p9 = scmp.ne.s32.totalorder %s929_s10, %s658_s16  ;;  %p663_p12 = scmp.lt.u32.totalorder %s929_s10, %s990_s5 }
  0xc1   : > { %p664_p13 = scmp.lt.u32.totalorder %s662_s30, %s658_s16  ;;  %p666_p1 = scmp.lt.u32.totalorder %s658_s16, %s929_s10 }
  0xc2   : > { %p660_p10 = pnand %p659_p9, %p826_p3 }
  0xc3   : > { %p665_p0 = por %p664_p13, %p663_p12 }
  0xc4   : > { %p661_p11 = pneg %p660_p10 }
  0xc5   : > { %p667_p2 = por %p666_p1, %p665_p0 }
  0xc7   : > { %p668_p4 = pnand %p667_p2, %p661_p11 }
  0xc9   : > { %671 = shalt.err (!%p668_p4)
}
  0xca   : > { %s742_s22 = smov 128   ;;  %s743_s13 = smov 256  }
  0xcb   : > { %s744_s14 = smov 8  }
  0xcc   : > { %565 = dma.vmem_to_hbm [thread:$0]  (%p826_p3), %s924_s8, 512, %s929_s10, %s933_s12, %s742_s22, %s743_s13, %s744_s14  }
  0xcd PF: > { %p571_p5 = scmp.ge.s32.totalorder %s738_s25, 2  ;;  %s474_s15 = sand.u32 1, %s710_s18  }
  0xce   : > { %s475_s17 = scalar_lea.sflag [#allocation3], %s474_s15 }
  0xcf   : > { %p568_p6 = pnand %p571_p5, %p835_p8 }
  0xd1   : > { %705 = dma.done.wait (!%p568_p6), %s475_s17, 512  }
  0xd2   : > { %707 = vsyncadd (!%p568_p6), %s475_s17, 4294966784  ;;  %s18_s25 = sadd.s32 1, %s738_s25   ;;  %s993_s18 = smov %s714_s19 }
  0xd3   : > { %p15_p7 = scmp.ge.s32.totalorder %s18_s25, 6   ;;  %s994_s19 = smov %s718_s20 }
  0xd4   : > { %s995_s20 = smov %s844_s11  ;;  %s996_s21 = smov %s730_s23 }
  0xd5   : > { %s997_s22 = smov %s734_s24  ;;  %s998_s23 = smov %s1001_s28 }
  0xd6   : > { %s999_s24 = smov %s1005_s29  ;;  %17 = sbr.rel (!%p15_p7) target bundleno = 5 (0x5), region = 78 }
  0xdd   :  { %480 = vsyncpa [#allocation3], 1 }
  0xde   :  { %482 = vsyncpa [#allocation3 + $0x1], 1 }

</bundles_post_ra>
